<compile_context>
chip_gen: v7x
topology: tpu7x:2x2x1
jax: 0.10.0
libtpu: 0.0.40
codegen_flags: <defaults>
</compile_context>

<pallas_src>
import functools

import jax
import jax.numpy as jnp
from jax import lax
from jax.experimental import pallas as pl
from jax.experimental.pallas import tpu as pltpu


def _rescale_kernel(r_ref, *refs, mode: str, packed: bool):
    # r_ref: SMEM (1,) f32 radius.
    # packed:   refs = (seg_ref (128,128) f32, x_ref (tm,128), o_ref (tm,128))
    # unpacked: refs = (x_ref (tm,D), o_ref (tm,D))
    if packed:
        seg_ref, x_ref, o_ref = refs
    else:
        x_ref, o_ref = refs

    xf = x_ref[...].astype(jnp.float32)
    r = r_ref[0]
    xx = xf * xf

    if packed:
        # Each kernel row holds 128 // D logical rows of width D.  Segmented
        # sum-of-squares, broadcast back to every lane of its segment, via the
        # resident 0/1 block-diagonal (128,128) matmul on the otherwise-idle MXU.
        sumsq = jnp.dot(xx, seg_ref[...], preferred_element_type=jnp.float32)
    else:
        sumsq = jnp.sum(xx, axis=-1, keepdims=True)

    inv_norm = lax.rsqrt(sumsq)            # EUP op, co-issues with VPU work
    if mode == "eq":
        scale = r * inv_norm               # x / ||x|| * r
    else:
        # 'leq': shrink only rows whose norm exceeds r.  sumsq > r^2 <=> norm > r
        # for a nonnegative radius; zero-norm rows take the keep branch (scale 1).
        scale = jnp.where(sumsq > r * r, r * inv_norm, jnp.float32(1.0))

    # f32 multiply, single cast on store.
    o_ref[...] = (xf * scale).astype(o_ref.dtype)


def _round_up(a: int, b: int) -> int:
    return (a + b - 1) // b * b


def _default_block_bytes() -> int:
    # v7x (~3.2 TB/s HBM, 64 MiB VMEM): larger tiles amortize the ~0.35 us/step
    # overhead.  v5e/v6e: 4 MiB tiles already sit at ~85%+ of the HBM roofline.
    try:
        kind = jax.devices()[0].device_kind.lower()
    except Exception:
        return 4 << 20
    return (8 << 20) if ("v7" in kind or "7x" in kind) else (4 << 20)


def rescale(x, r, mode: str = "eq", *, block_bytes: int | None = None):
    """Pallas implementation of RescaleLayer.forward.

    x: array of shape (..., D); norm taken over last dim.
    r: radius parameter, shape (1,).
    """
    assert mode in ("eq", "leq")
    orig_shape = x.shape
    D = orig_shape[-1]
    dtype = x.dtype
    x2d = x.reshape(-1, D)
    N = x2d.shape[0]
    if N == 0:
        return x
    if block_bytes is None:
        block_bytes = _default_block_bytes()
    itemsize = jnp.dtype(dtype).itemsize

    # Lane-dense packing for narrow D: P = 128 // D logical rows per 128-lane row.
    # TODO(synk): D < 128 with 128 % D != 0 (e.g. 96) still takes the lane-sparse
    # unpacked path (masked partial stores); extend packing over lcm(D,128) if such
    # hidden sizes show up in practice.
    packed = (D < 128) and (128 % D == 0)
    P = 128 // D if packed else 1
    W = 128 if packed else D

    # Only pad when the packed view needs it (< P rows of pad); otherwise the
    # reshape below is a free, layout-preserving bitcast.
    n_pack = _round_up(N, P)
    if n_pack != N:
        x2d = jnp.pad(x2d, ((0, n_pack - N), (0, 0)))
    rows = n_pack // P
    xk = x2d.reshape(rows, W)

    # Row-tile sizing: biggest multiple of 8 such that one (tm, W) block ~ block_bytes,
    # never larger than the data, and small enough that the grid has >= 2 steps so
    # both v7x TensorCores get work.  in + out double-buffered -> ~4*block_bytes VMEM
    # (+64 KiB seg), well under the scoped limit below on all generations.
    row_bytes = W * itemsize
    if rows < 8:
        tm = rows                                      # full-extent block
    else:
        tm = max(8, min((block_bytes // row_bytes) // 8 * 8, rows // 8 * 8))
        if rows >= 16:
            tm = min(tm, max(8, (rows // 2) // 8 * 8))
    grid = (pl.cdiv(rows, tm),)   # ragged last block: OOB rows are never written back

    in_specs = [pl.BlockSpec(memory_space=pltpu.MemorySpace.SMEM)]   # r (scalar param)
    args = [r.astype(jnp.float32)]
    if packed:
        lane = jnp.arange(W, dtype=jnp.int32)
        seg = (lane[:, None] // D == lane[None, :] // D).astype(jnp.float32)
        # Constant block index -> DMA'd once, stays resident across all grid steps.
        in_specs.append(pl.BlockSpec((W, W), lambda i: (0, 0)))
        args.append(seg)
    in_specs.append(pl.BlockSpec((tm, W), lambda i: (i, 0)))          # x rows
    args.append(xk)

    out = pl.pallas_call(
        functools.partial(_rescale_kernel, mode=mode, packed=packed),
        out_shape=jax.ShapeDtypeStruct((rows, W), dtype),
        grid_spec=pltpu.PrefetchScalarGridSpec(
            num_scalar_prefetch=0,
            grid=grid,
            in_specs=in_specs,
            out_specs=pl.BlockSpec((tm, W), lambda i: (i, 0)),
        ),
        compiler_params=pltpu.CompilerParams(
            dimension_semantics=("parallel",),   # megacore / v7x 2-TC sharding
            vmem_limit_bytes=48 << 20,           # > v5e's 16 MiB default, < v7x's 64 MiB physical
        ),
    )(*args)

    out2d = out.reshape(rows * P, D)
    if rows * P != N:
        # Only when N % P != 0: drop the (< P) padded logical rows.
        out2d = out2d[:N]
    return out2d.reshape(orig_shape)


if __name__ == "__main__":
    # Deterministic parameter init (matches nn.Parameter(torch.ones(1) * init_r))
    init_r = 1.0
    r = jnp.ones((1,), dtype=jnp.float32) * init_r

    key = jax.random.PRNGKey(0)
    k1, k2, k3, k4, k5 = jax.random.split(key, 5)

    def ref_eq(x, rr):
        norm = jnp.linalg.norm(x, axis=-1, keepdims=True)
        return x / norm * rr

    def ref_leq(x, rr):
        norm = jnp.linalg.norm(x, axis=-1, keepdims=True)
        return jnp.where(norm > rr, x * (rr / norm), x)

    cases = [
        jax.random.normal(k1, (2, 8, 32), dtype=jnp.float32),    # packed, divisible
        jax.random.normal(k2, (3, 5, 32), dtype=jnp.float32),    # packed, tiny pad to P
        jax.random.normal(k3, (4, 128), dtype=jnp.float32),      # lane-aligned, full block
        jax.random.normal(k4, (4, 37, 256), dtype=jnp.float32),  # unpacked, ragged last block
    ]

    ok = True
    for x in cases:
        y_eq = rescale(x, r, mode="eq")
        y_leq = rescale(x, r, mode="leq")
        jax.block_until_ready((y_eq, y_leq))
        ok &= bool(jnp.allclose(y_eq, ref_eq(x, r), atol=1e-5, rtol=1e-5))
        ok &= bool(jnp.allclose(y_leq, ref_leq(x, r), atol=1e-5, rtol=1e-5))

    # packed path with forced-small tiles: multi-step grid + ragged last block + pad
    x_small = jax.random.normal(k5, (2, 37, 32), dtype=jnp.float32)
    y_small = rescale(x_small, r, mode="eq", block_bytes=8 * 128 * 4)
    jax.block_until_ready(y_small)
    ok &= bool(jnp.allclose(y_small, ref_eq(x_small, r), atol=1e-5, rtol=1e-5))

    # 'leq' with a radius that splits rows into shrink / keep branches
    r_mid = jnp.array([5.7], dtype=jnp.float32)
    y_mid = rescale(cases[0], r_mid, mode="leq")
    jax.block_until_ready(y_mid)
    ok &= bool(jnp.allclose(y_mid, ref_leq(cases[0], r_mid), atol=1e-5, rtol=1e-5))

    assert ok
    print("KERNEL_OK")
</pallas_src>

<mosaic_0001>
module attributes {stable_mosaic.version = 11 : i64} {
  func.func @_rescale_kernel(%arg0: i32, %arg1: memref<1xf32, #tpu.memory_space<smem>>, %arg2: memref<128x128xf32, #tpu.memory_space<vmem>>, %arg3: memref<4x128xf32, #tpu.memory_space<vmem>>, %arg4: memref<4x128xf32, #tpu.memory_space<vmem>>) attributes {dimension_semantics = [#tpu.dimension_semantics<parallel>], iteration_bounds = array<i64: 1>, scalar_prefetch = 0 : i64, scratch_operands = 0 : i64, tpu.core_type = #tpu.core_type<tc>, window_params = [{transform_indices = @transform_0, window_bounds = array<i64: 1>}, {pipeline_mode = #tpu.pipeline_mode<synchronous>, transform_indices = @transform_1, window_bounds = array<i64: 128, 128>}, {transform_indices = @transform_2, window_bounds = array<i64: 4, 128>}, {transform_indices = @transform_3, window_bounds = array<i64: 4, 128>}]} {
    %c0 = arith.constant 0 : index
    %c0_0 = arith.constant 0 : index
    %0 = vector.load %arg3[%c0, %c0_0] : memref<4x128xf32, #tpu.memory_space<vmem>>, vector<4x128xf32>
    %c0_1 = arith.constant 0 : index
    %1 = memref.load %arg1[%c0_1] : memref<1xf32, #tpu.memory_space<smem>>
    %2 = arith.mulf %0, %0 : vector<4x128xf32>
    %c0_2 = arith.constant 0 : index
    %c0_3 = arith.constant 0 : index
    %3 = vector.load %arg2[%c0_2, %c0_3] : memref<128x128xf32, #tpu.memory_space<vmem>>, vector<128x128xf32>
    %cst = arith.constant dense<0.000000e+00> : vector<4x128xf32>
    %4 = tpu.matmul %2, %3, %cst {dimension_numbers = #tpu.dot_dimension_numbers<[1], [0], [0], [1], [0, 0, 1, 1], [], []>} : vector<4x128xf32>, vector<128x128xf32>, vector<4x128xf32> -> vector<4x128xf32>
    %5 = math.rsqrt %4 : vector<4x128xf32>
    %6 = vector.broadcast %1 : f32 to vector<4x128xf32>
    %7 = arith.mulf %6, %5 : vector<4x128xf32>
    %8 = arith.mulf %0, %7 : vector<4x128xf32>
    %c0_4 = arith.constant 0 : index
    %c0_5 = arith.constant 0 : index
    %9 = vector.load %arg4[%c0_4, %c0_5] : memref<4x128xf32, #tpu.memory_space<vmem>>, vector<4x128xf32>
    tpu.vector_store %arg4[%c0_4, %c0_5], %8 {strides = array<i32>} : memref<4x128xf32, #tpu.memory_space<vmem>>, vector<4x128xf32>,
    return
  }
  func.func @transform_0(%arg0: i32) -> i32 {
    %c0_i32 = arith.constant 0 : i32
    %c0_i32_0 = arith.constant 0 : i32
    return %c0_i32 : i32
  }
  func.func @transform_1(%arg0: i32) -> (i32, i32) {
    %c0_i32 = arith.constant 0 : i32
    %c0_i32_0 = arith.constant 0 : i32
    %c0_i32_1 = arith.constant 0 : i32
    return %c0_i32, %c0_i32_0 : i32, i32
  }
  func.func @transform_2(%arg0: i32) -> (i32, i32) {
    %c0_i32 = arith.constant 0 : i32
    %c0_i32_0 = arith.constant 0 : i32
    return %arg0, %c0_i32 : i32, i32
  }
  func.func @transform_3(%arg0: i32) -> (i32, i32) {
    %c0_i32 = arith.constant 0 : i32
    %c0_i32_0 = arith.constant 0 : i32
    return %arg0, %c0_i32 : i32, i32
  }
}

</mosaic_0001>

<bundles_post_ra>
// kernel: tpu_custom_call.1
= control target key start
LH: loop header
LB: loop body
LE: loop exit
PB: predicated region body
PF: predicated region fallthrough
CT: control target
= control target key end

     0   :  { %9 = vsyncpa [#allocation4], 0  ;;  %s329_s0 = inlined_call_operand.<no memory space> [shape: f32[1], index: 0, kind: input, shape index: {}]   ;;  %s330_s1 = inlined_call_operand.hbm [shape: f32[128,128], index: 1, kind: input, shape index: {}]   ;;  %s331_s2 = inlined_call_operand.vmem [shape: f32[4,128], index: 2, kind: input, shape index: {}]   ;;  %s332_s3 = inlined_call_operand.hbm [shape: f32[4,128], index: 3, kind: output, shape index: {}]  }
   0x1   :  { %10 = vsyncpa [#allocation5], 0  ;;  %s272_s12 = smov [#allocation3]   ;;  %s224_s16 = scalar_lea.hbm %s330_s1, 2048 }
   0x2   :  { %s18_s13 = sshll.u32 %s272_s12, 4  ;;  %p225_p0 = scmp.ne.s32.totalorder %s330_s1, %s224_s16  ;;  %s19_s13 = int_to_ptr.vmem [resolvable:$true] %s18_s13 }
   0x3   :  { %p228_p1 = scmp.lt.u32.totalorder %s224_s16, %s330_s1 }
   0x5   :  { %p230_p2 = pnand %p228_p1, %p225_p0 }
   0x7   :  { %233 = shalt.err (!%p230_p2)
}
   0x8   :  { %s234_s21 = scalar_lea.vmem %s19_s13, 2048  ;;  %p239_p4 = scmp.lt.s32.totalorder %s19_s13, %s19_s13 }
   0x9   :  { %p235_p3 = scmp.ne.s32.totalorder %s19_s13, %s234_s21  ;;  %p240_p5 = scmp.lt.s32.totalorder %s234_s21, %s234_s21 }
   0xb   :  { %p241_p6 = por %p240_p5, %p239_p4 }
   0xd   :  { %p242_p7 = pnand %p241_p6, %p235_p3 }
   0xf   :  { %245 = shalt.err (!%p242_p7)
}
  0x10   :  { %s273_s22 = smov 128   ;;  %s274_s23 = smov 8  }
  0x11   :  { %24 = dma.hbm_to_vmem [thread:$0]  %s330_s1, 2048, %s19_s13, [#allocation4], %s273_s22, %s273_s22, %s274_s23  }
  0x12   :  { %268 = dma.done.wait [#allocation4], 2048  }
  0x13   :  { %269 = vsyncadd [#allocation4], 4294965248  ;;  %v275_v0 = vmov 0.0|0.0   ;;  %vm276_vm0 = vmmov 0   ;;  %v277_v1 = vmov 0.0   ;;  %v33_v2 = vld [vmem:[#allocation3] sm:$0xff]  ;;  %v120_v30 = vstv %s329_s0 }
  0x14   :  { %191 = vmatprep.subr.bf16.mxu0 %v275_v0  ;;  %188 = vmatprep.mubr.msk.f32.mxu0 %vm276_vm0, %v277_v1  ;;  %v34_v3 = vld [vmem:[#allocation3 + $0x8] sm:$0xff]  ;;  %v35_v4 = vld [vmem:[#allocation3 + $0x10] sm:$0xff]  ;;  %v36_v6 = vld [vmem:[#allocation3 + $0x18] sm:$0xff]  ;;  %s278_s29 = smov [#allocation6]  }
  0x15   :  { %v192_v5 = vpack.c.bf16 %v34_v3, %v33_v2  ;;  %v195_v7 = vpack.c.bf16 %v36_v6, %v35_v4  ;;  %v37_v8 = vld [vmem:[#allocation3 + $0x20] sm:$0xff]  ;;  %v38_v9 = vld [vmem:[#allocation3 + $0x28] sm:$0xff]  ;;  %v39_v11 = vld [vmem:[#allocation3 + $0x30] sm:$0xff]  ;;  %s130_s30 = sshll.u32 %s278_s29, 4  ;;  %s131_s30 = int_to_ptr.vmem [resolvable:$true] %s130_s30 }
  0x16   :  { %v198_v10 = vpack.c.bf16 %v38_v9, %v37_v8  ;;  %v40_v12 = vld [vmem:[#allocation3 + $0x38] sm:$0xff]  ;;  %v41_v14 = vld [vmem:[#allocation3 + $0x40] sm:$0xff]  ;;  %v42_v15 = vld [vmem:[#allocation3 + $0x48] sm:$0xff]  ;;  %s246_s4 = scalar_lea.vmem %s131_s30, 64  ;;  %p251_p9 = scmp.lt.s32.totalorder %s131_s30, %s131_s30 }
  0x17   :  { %193 = vmatpush3.bf16.msra.mxu0 %v192_v5  ;;  %v201_v13 = vpack.c.bf16 %v40_v12, %v39_v11  ;;  %v204_v16 = vpack.c.bf16 %v42_v15, %v41_v14  ;;  %v43_v17 = vld [vmem:[#allocation3 + $0x50] sm:$0xff]  ;;  %v44_v18 = vld [vmem:[#allocation3 + $0x58] sm:$0xff]  ;;  %v45_v20 = vld [vmem:[#allocation3 + $0x60] sm:$0xff]  ;;  %p247_p8 = scmp.ne.s32.totalorder %s131_s30, %s246_s4  ;;  %p252_p10 = scmp.lt.s32.totalorder %s246_s4, %s246_s4 }
  0x18   :  { %194 = vmatprep.subr.bf16.mxu0 %v275_v0  ;;  %v207_v19 = vpack.c.bf16 %v44_v18, %v43_v17  ;;  %v46_v21 = vld [vmem:[#allocation3 + $0x68] sm:$0xff]  ;;  %v47_v23 = vld [vmem:[#allocation3 + $0x70] sm:$0xff]  ;;  %v48_v24 = vld [vmem:[#allocation3 + $0x78] sm:$0xff] }
  0x19   :  { %v210_v22 = vpack.c.bf16 %v46_v21, %v45_v20  ;;  %v213_v25 = vpack.c.bf16 %v48_v24, %v47_v23  ;;  %v30_v26 = vld [vmem:[%s331_s2] sm:$0xf]  ;;  %p253_p11 = por %p252_p10, %p251_p9 }
  0x1a   :  { %v32_v27 = vmul.f32 %v30_v26, %v30_v26 }
  0x1b   :  { %196 = vmatpush3.bf16.msra.mxu0 %v195_v7  ;;  %p254_p12 = pnand %p253_p11, %p247_p8 }
  0x1c   :  { %197 = vmatprep.subr.bf16.mxu0 %v275_v0 }
  0x1f   :  { %199 = vmatpush3.bf16.msra.mxu0 %v198_v10 }
  0x20   :  { %200 = vmatprep.subr.bf16.mxu0 %v275_v0 }
  0x23   :  { %202 = vmatpush3.bf16.msra.mxu0 %v201_v13 }
  0x24   :  { %203 = vmatprep.subr.bf16.mxu0 %v275_v0 }
  0x27   :  { %205 = vmatpush3.bf16.msra.mxu0 %v204_v16 }
  0x28   :  { %206 = vmatprep.subr.bf16.mxu0 %v275_v0 }
  0x2b   :  { %208 = vmatpush3.bf16.msra.mxu0 %v207_v19 }
  0x2c   :  { %209 = vmatprep.subr.bf16.mxu0 %v275_v0 }
  0x2f   :  { %211 = vmatpush3.bf16.msra.mxu0 %v210_v22 }
  0x30   :  { %212 = vmatprep.subr.bf16.mxu0 %v275_v0 }
  0x33   :  { %214 = vmatpush3.bf16.msra.mxu0 %v213_v25 }
  0x36   :  { %189 = vmatmul.mubr.f32.vlgmr.msra.gmra.mrb[0].mxu0 %v32_v27 }
 0x109   :  { %v115_v28 = vpop.f32.mrb[0].mxu0 }
 0x10a   :  { %222 = vrsqrt.f32 %v115_v28  ;;  %v190_v29 = vpop.f32.mrb[1].mxu0 }
 0x114   :  { %v223_v31 = vpop.eup %222 }
 0x115   :  { %v121_v32 = vmul.f32 %v223_v31, %v120_v30 }
 0x117   :  { %v122_v33 = vmul.f32 %v121_v32, %v30_v26 }
 0x119   :  { %123 = vst [vmem:[#allocation6] sm:$0xf] %v122_v33 }
 0x11a   :  { %257 = shalt.err (!%p254_p12)
}
 0x11b   :  { %s258_s6 = scalar_lea.hbm %s332_s3, 64 }
 0x11c   :  { %p259_p13 = scmp.ne.s32.totalorder %s332_s3, %s258_s6  ;;  %p262_p0 = scmp.lt.u32.totalorder %s258_s6, %s332_s3 }
 0x11e   :  { %p264_p1 = pnand %p262_p0, %p259_p13 }
 0x120   :  { %267 = shalt.err (!%p264_p1)
}
 0x121   :  { %133 = dma.vmem_to_hbm [thread:$0]  %s131_s30, 64, %s332_s3, [#allocation5]  }
 0x122   :  { %270 = dma.done.wait [#allocation5], 64  }
 0x123   :  { %271 = vsyncadd [#allocation5], 4294967232 }
 0x124   :  { %137 = vsyncpa [#allocation4], 1 }
 0x125   :  { %138 = vsyncpa [#allocation5], 1 }

</bundles_post_ra>
